<compile_context>
chip_gen: v7x
topology: tpu7x:2x2x1
jax: 0.10.0
libtpu: 0.0.40
codegen_flags: <defaults>
</compile_context>

<pallas_src>
import numpy as np
import jax
import jax.numpy as jnp
from jax import lax
from jax.experimental import pallas as pl
from jax.experimental.pallas import tpu as pltpu


def _round_up(x, m):
    return ((x + m - 1) // m) * m


def _choose_tile_r(rows):
    """Row tile: a single grid step for small inputs (per-step overhead ~0.35us would dominate and
    tiny tiles underfill the MXU M dim); for large inputs use 512-1024-row tiles while keeping
    >=2 grid steps so the v7x dual TensorCore can shard the 'parallel' grid axis (>=256 rows/core)."""
    r16 = _round_up(max(rows, 1), 16)           # 16-row multiples: native bf16 sublane tile
    if r16 <= 512:
        return r16
    return min(1024, _round_up((r16 + 1) // 2, 16))


def _make_basis(n_fft, w_pad, f_pad):
    """Single fused basis (w_pad, 2*f_pad): columns [0:F) are win*cos*sqrt(coef/N), columns
    [f_pad:f_pad+F) are -win*sin*sqrt(coef/N); rows beyond n_fft (odd FFT sizes) are zero.
    Using it for BOTH the forward and (transposed) inverse matmul gives exactly the
    win*coef/N*(cos,-sin) round trip == torch.stft/istft math."""
    N = n_fft
    F = N // 2 + 1
    n = np.arange(N, dtype=np.float64)
    w = 0.54 - 0.46 * np.cos(2.0 * np.pi * n / N)      # periodic Hamming (torch default)
    f = np.arange(F, dtype=np.float64)
    theta = 2.0 * np.pi * np.outer(n, f) / N           # (N, F)
    coef = np.full((F,), 2.0)
    coef[0] = 1.0
    if N % 2 == 0:
        coef[-1] = 1.0                                 # Nyquist bin un-doubled
    s = np.sqrt(coef / N)
    basis = np.zeros((w_pad, 2 * f_pad), np.float32)
    basis[:N, :F] = (w[:, None] * np.cos(theta) * s[None, :]).astype(np.float32)
    basis[:N, f_pad:f_pad + F] = (-(w[:, None]) * np.sin(theta) * s[None, :]).astype(np.float32)
    return basis, w.astype(np.float32)


def _recon_frames_kernel(frames_ref, mask_ref, basis_ref, out_ref, mpad_ref):
    # frames_ref: (TR, Wp) bf16   mask_ref: (TR, F) f32   basis_ref: (Wp, 2*Fp) bf16
    # out_ref:    (TR, Wp) f32    mpad_ref: (TR, Fp) f32 scratch
    f_dim = mask_ref.shape[-1]
    fp = mpad_ref.shape[-1]

    # Zero-extend the mask to a lane-aligned (TR, Fp) tile in VMEM.  The pad lanes only ever
    # multiply exactly-zero spectrum lanes (zero basis columns), so they just need to be finite;
    # zeroing them guards against NaN garbage.  This keeps the mask DMA at its natural F width.
    mpad_ref[...] = jnp.zeros_like(mpad_ref)
    mpad_ref[:, :f_dim] = mask_ref[...]
    m = mpad_ref[...]                                               # (TR, Fp) f32

    basis = basis_ref[...]                                          # bf16
    # forward windowed DFT: bf16 operands, f32 MXU accumulation
    spec = jnp.dot(frames_ref[...], basis,
                   preferred_element_type=jnp.float32)              # (TR, 2*Fp) f32
    # mask both halves in f32; Fp is a multiple of 128 so these value slices are free
    re = spec[:, :fp] * m
    im = spec[:, fp:] * m
    masked = jnp.concatenate([re, im], axis=-1).astype(jnp.bfloat16)
    # inverse windowed DFT: contract both operands on the lane (frequency) dim -> masked @ basis.T
    y = lax.dot_general(masked, basis,
                        dimension_numbers=(((1,), (1,)), ((), ())),
                        preferred_element_type=jnp.float32)         # (TR, Wp) f32
    out_ref[...] = y


class ReconstructMask2WavePallas:
    """predict_mask is expected in (B, T, F) layout (the layout the torch module's callers pass;
    the torch code transposes it to (B, F, T) to match torch.stft's magnitude)."""

    def __init__(self, n_fft, hop_length, win_type='hamming', win_length=None, rescale=False):
        assert win_type == 'hamming'          # TODO(synk): other window types
        self.n_fft = int(n_fft)
        self.hop = int(hop_length)
        self.win_length = int(win_length) if win_length is not None else self.n_fft
        assert self.win_length == self.n_fft  # TODO(synk): win_length < n_fft (centered zero-padded window)
        self.rescale = rescale
        self.F = self.n_fft // 2 + 1
        self.f_pad = _round_up(self.F, 128)
        self.w_pad = _round_up(self.n_fft, 128)     # lane-dense output blocks even for odd n_fft
        basis, win = _make_basis(self.n_fft, self.w_pad, self.f_pad)
        self.basis_f32 = jnp.asarray(basis)                          # reference path only
        self.basis_bf16 = jnp.asarray(basis, dtype=jnp.bfloat16)     # MXU operands
        self._win_np = win

    # ---- Pallas hot path: framed DFT -> mask -> inverse DFT ----
    def _pallas_frames(self, frames2d, mask2d):
        rows = frames2d.shape[0]
        W, Wp, Fp, Fdim = self.n_fft, self.w_pad, self.f_pad, self.F

        # VMEM budget: leave headroom below physical capacity (48 MiB on v7x's 64 MiB TC,
        # 64 MiB on v5e/v6e's 128 MiB).
        try:
            phys_vmem = int(pltpu.get_tpu_info().vmem_capacity_bytes)
        except Exception:
            phys_vmem = 128 * 2 ** 20
        vmem_budget = min(64 * 2 ** 20, (phys_vmem * 3) // 4)

        basis_bytes = 2 * Wp * 2 * Fp                       # bf16
        single_buffer_basis = basis_bytes > (2 << 20)       # only worth it / exercised for big n_fft
        basis_vmem = basis_bytes if single_buffer_basis else 2 * basis_bytes

        def _tile_bytes(tr):
            io = 2 * (2 * tr * Wp + 4 * tr * Fdim + 4 * tr * Wp)     # double-buffered frames/mask/out
            interm = 4 * tr * 2 * Fp + 2 * tr * 2 * Fp + 4 * tr * Fp  # spec + masked(bf16) + mask scratch
            return io + interm

        tile_r = _choose_tile_r(rows)
        while tile_r > 16 and basis_vmem + _tile_bytes(tile_r) + (2 << 20) > vmem_budget:
            tile_r = _round_up(tile_r // 2, 16)
        rows_pad = _round_up(rows, tile_r)

        # frames -> bf16 MXU operand (XLA fuses the cast/pad with the framing concat); only
        # row-pad / W-pad when actually needed so no extra HBM pass in the common case.
        frames_b = frames2d.astype(jnp.bfloat16)
        if rows_pad != rows or Wp != W:
            frames_b = jnp.pad(frames_b, ((0, rows_pad - rows), (0, Wp - W)))
        # mask stays at its natural F lanes (lane-padding happens inside the kernel)
        mask_p = mask2d if rows_pad == rows else jnp.pad(mask2d, ((0, rows_pad - rows), (0, 0)))

        vmem_need = basis_vmem + _tile_bytes(tile_r) + (2 << 20)
        vmem_limit = int(min(max(vmem_need, 16 * 2 ** 20), vmem_budget))

        cost = pl.CostEstimate(
            flops=int(8 * rows_pad * Wp * Fp),
            transcendentals=0,
            bytes_accessed=int(rows_pad * (2 * Wp + 4 * Fdim + 4 * Wp) + basis_bytes),
        )

        basis_spec_kwargs = {}
        if single_buffer_basis:
            # constant index_map already skips re-DMA; Buffered(1) also reclaims the second VMEM
            # copy (matters on v7x for n_fft >= 1024 where the bf16 basis is several MiB).
            basis_spec_kwargs["pipeline_mode"] = pl.Buffered(1)

        in_specs = [
            pl.BlockSpec((tile_r, Wp), lambda i: (i, 0)),
            pl.BlockSpec((tile_r, Fdim), lambda i: (i, 0)),     # natural 65-lane mask block
            pl.BlockSpec((Wp, 2 * Fp), lambda i: (0, 0), **basis_spec_kwargs),
        ]

        out = pl.pallas_call(
            _recon_frames_kernel,
            out_shape=jax.ShapeDtypeStruct((rows_pad, Wp), jnp.float32),
            grid_spec=pltpu.PrefetchScalarGridSpec(
                num_scalar_prefetch=0,
                grid=(rows_pad // tile_r,),
                in_specs=in_specs,
                out_specs=pl.BlockSpec((tile_r, Wp), lambda i: (i, 0)),
                scratch_shapes=[pltpu.VMEM((tile_r, Fp), jnp.float32)],
            ),
            compiler_params=pltpu.CompilerParams(
                dimension_semantics=("parallel",),
                vmem_limit_bytes=vmem_limit,
            ),
            cost_estimate=cost,
        )(frames_b, mask_p, self.basis_bf16)
        return out[:rows, :W]

    # ---- pure-JAX f32 reference for the hot path (same basis math, torch-equivalent) ----
    def _reference_frames(self, frames2d, mask2d):
        b = self.basis_f32[:self.n_fft]
        m = jnp.pad(mask2d, ((0, 0), (0, self.f_pad - self.F)))
        spec = frames2d @ b
        masked = jnp.concatenate([m, m], axis=-1) * spec
        return masked @ b.T

    # ---- framing (dense reshape path when n_fft % hop == 0, else gather fallback) ----
    def _frame(self, xp, B, T):
        W, hop = self.n_fft, self.hop
        if W % hop == 0:
            C = W // hop
            xp_trim = xp[:, :(T - 1) * hop + W]
            chunks = xp_trim.reshape(B, T + C - 1, hop)
            parts = [chunks[:, c:c + T][:, :, None, :] for c in range(C)]
            return jnp.concatenate(parts, axis=2).reshape(B, T, W)
        # NOTE: slow gather fallback for W % hop != 0 (correct but TPU-unfriendly)
        starts = jnp.arange(T) * hop
        idx = starts[:, None] + jnp.arange(W)[None, :]
        return xp[:, idx]

    # ---- overlap-add (dense fold when n_fft % hop == 0, else scatter fallback) ----
    def _overlap_add(self, yframes, B, T):
        W, hop = self.n_fft, self.hop
        out_len = (T - 1) * hop + W
        if W % hop == 0:
            C = W // hop
            ch = yframes.reshape(B, T, C, hop)
            ola = None
            for c in range(C):
                p = jnp.pad(ch[:, :, c, :], ((0, 0), (c, C - 1 - c), (0, 0)))
                ola = p if ola is None else ola + p
            return ola.reshape(B, out_len)
        # NOTE: slow scatter-add fallback for W % hop != 0
        starts = np.arange(T) * hop
        idx = (starts[:, None] + np.arange(W)[None, :]).reshape(-1)
        return jnp.zeros((B, out_len), jnp.float32).at[:, idx].add(yframes.reshape(B, -1))

    # ---- window^2 normalization, hoisted to a numpy constant (depends only on T, L) ----
    def _inv_window_norm(self, T, L):
        W, hop, pad = self.n_fft, self.hop, self.n_fft // 2
        out_len = (T - 1) * hop + W
        need = pad + L
        wsq = np.zeros(max(out_len, need), np.float64)
        wf = self._win_np.astype(np.float64) ** 2
        for t in range(T):
            wsq[t * hop:t * hop + W] += wf
        inv = 1.0 / np.maximum(wsq, 1e-11)   # NOTE: floors NOLA violations instead of raising like torch
        return jnp.asarray(inv[pad:pad + L], jnp.float32)

    def __call__(self, predict_mask, mixture_wave, clean_wave=None, use_pallas=True):
        # torch's /2^15 ... *2^15 pair cancels exactly (linear pipeline, power-of-two) -> omitted.
        x = jnp.asarray(mixture_wave).astype(jnp.float32)
        mask = jnp.asarray(predict_mask).astype(jnp.float32)
        was_1d = x.ndim == 1
        if was_1d:
            x = x[None, :]
            mask = mask[None, ...]
        B, L = x.shape
        T = 1 + L // self.hop
        assert mask.shape == (B, T, self.F), "predict_mask must be (B, T, F) frame-major"

        pad = self.n_fft // 2
        xp = jnp.pad(x, ((0, 0), (pad, pad)), mode='reflect')   # torch.stft center=True reflect pad

        frames = self._frame(xp, B, T)                           # (B, T, W)
        frames2d = frames.reshape(B * T, self.n_fft)
        mask2d = mask.reshape(B * T, self.F)
        if use_pallas:
            yframes = self._pallas_frames(frames2d, mask2d)
        else:
            yframes = self._reference_frames(frames2d, mask2d)
        yframes = yframes.reshape(B, T, self.n_fft)

        ola = self._overlap_add(yframes, B, T)
        need = pad + L
        if ola.shape[1] < need:
            ola = jnp.pad(ola, ((0, 0), (0, need - ola.shape[1])))
        wave = ola[:, pad:pad + L] * self._inv_window_norm(T, L)[None, :]

        if was_1d:
            w1 = wave[0]
            if self.rescale:
                cw = jnp.asarray(clean_wave).astype(jnp.float32)
                den = jnp.sum(w1 * w1)
                r = jnp.where(den > 0, jnp.sum(cw * w1) / den, 1.0)
                w1 = r * w1
            vmax = jnp.max(jnp.abs(w1))
            w1 = jnp.where(vmax > 2.0 ** 15, w1 * (2.0 ** 14) / vmax, w1)
            return [w1[:L]]

        if self.rescale:
            cw = jnp.asarray(clean_wave).astype(jnp.float32)
            den = jnp.sum(wave * wave, axis=1, keepdims=True)
            r = jnp.where(den > 0, jnp.sum(cw * wave, axis=1, keepdims=True) / den, 1.0)
            wave = r * wave
        value_max = jnp.max(jnp.abs(wave), axis=1, keepdims=True)
        value_clip = jnp.where(value_max > 2.0 ** 15, jnp.full_like(value_max, 2.0 ** 14), value_max)
        # guard all-zero rows (torch would produce NaN here; keep the row at zero instead)
        wave = jnp.where(value_max > 0, wave * value_clip / value_max, wave)
        return [wave]


if __name__ == "__main__":
    B, L = 2, 1024
    n_fft, hop = 128, 64
    T = 1 + L // hop           # 17 frames (center=True)
    F = n_fft // 2 + 1         # 65 bins

    module = ReconstructMask2WavePallas(n_fft=n_fft, hop_length=hop, win_type='hamming', rescale=False)

    key = jax.random.PRNGKey(0)
    k_mask, k_wave = jax.random.split(key)
    predict_mask = jax.random.uniform(k_mask, (B, T, F), dtype=jnp.float32)                 # mask in [0, 1)
    mixture_wave = jax.random.randint(k_wave, (B, L), -2 ** 15, 2 ** 15, dtype=jnp.int32)   # int16-range samples

    out = jax.block_until_ready(module(predict_mask, mixture_wave)[0])
    ref = jax.block_until_ready(module(predict_mask, mixture_wave, use_pallas=False)[0])

    a, b = np.asarray(out), np.asarray(ref)
    assert a.shape == (B, L) and a.dtype == np.float32
    assert np.isfinite(a).all()
    # bf16 MXU operands (f32 accumulation): expected reconstruction error ~3e-3 of full scale
    # against the all-f32 reference; allow 2e-2 margin.
    assert np.max(np.abs(a - b)) <= 2e-2 * (np.max(np.abs(b)) + 1.0)
    print("KERNEL_OK")
</pallas_src>

<mosaic_0001>
module attributes {stable_mosaic.version = 11 : i64} {
  func.func @_recon_frames_kernel(%arg0: i32, %arg1: memref<48x128xbf16, #tpu.memory_space<vmem>>, %arg2: memref<48x65xf32, #tpu.memory_space<vmem>>, %arg3: memref<128x256xbf16, #tpu.memory_space<vmem>>, %arg4: memref<48x128xf32, #tpu.memory_space<vmem>>, %arg5: memref<48x128xf32, #tpu.memory_space<vmem>>) attributes {dimension_semantics = [#tpu.dimension_semantics<parallel>], iteration_bounds = array<i64: 1>, scalar_prefetch = 0 : i64, scratch_operands = 1 : i64, tpu.core_type = #tpu.core_type<tc>, window_params = [{transform_indices = @transform_0, window_bounds = array<i64: 48, 128>}, {transform_indices = @transform_1, window_bounds = array<i64: 48, 65>}, {pipeline_mode = #tpu.pipeline_mode<synchronous>, transform_indices = @transform_2, window_bounds = array<i64: 128, 256>}, {transform_indices = @transform_3, window_bounds = array<i64: 48, 128>}]} {
    %cst = arith.constant 0.000000e+00 : f32
    %0 = vector.broadcast %cst : f32 to vector<48x128xf32>
    %c0 = arith.constant 0 : index
    %c0_0 = arith.constant 0 : index
    %1 = vector.load %arg5[%c0, %c0_0] : memref<48x128xf32, #tpu.memory_space<vmem>>, vector<48x128xf32>
    tpu.vector_store %arg5[%c0, %c0_0], %0 {strides = array<i32>} : memref<48x128xf32, #tpu.memory_space<vmem>>, vector<48x128xf32>,
    %c0_1 = arith.constant 0 : index
    %c0_2 = arith.constant 0 : index
    %2 = vector.load %arg2[%c0_1, %c0_2] : memref<48x65xf32, #tpu.memory_space<vmem>>, vector<48x65xf32>
    %c0_3 = arith.constant 0 : index
    %c0_4 = arith.constant 0 : index
    %3 = vector.load %arg5[%c0_3, %c0_4] : memref<48x128xf32, #tpu.memory_space<vmem>>, vector<48x65xf32>
    tpu.vector_store %arg5[%c0_3, %c0_4], %2 {strides = array<i32>} : memref<48x128xf32, #tpu.memory_space<vmem>>, vector<48x65xf32>,
    %c0_5 = arith.constant 0 : index
    %c0_6 = arith.constant 0 : index
    %4 = vector.load %arg5[%c0_5, %c0_6] : memref<48x128xf32, #tpu.memory_space<vmem>>, vector<48x128xf32>
    %c0_7 = arith.constant 0 : index
    %c0_8 = arith.constant 0 : index
    %5 = vector.load %arg3[%c0_7, %c0_8] : memref<128x256xbf16, #tpu.memory_space<vmem>>, vector<128x256xbf16>
    %c0_9 = arith.constant 0 : index
    %c0_10 = arith.constant 0 : index
    %6 = vector.load %arg1[%c0_9, %c0_10] : memref<48x128xbf16, #tpu.memory_space<vmem>>, vector<48x128xbf16>
    %cst_11 = arith.constant dense<0.000000e+00> : vector<48x256xf32>
    %7 = tpu.matmul %6, %5, %cst_11 {dimension_numbers = #tpu.dot_dimension_numbers<[1], [0], [0], [1], [0, 0, 1, 1], [], []>} : vector<48x128xbf16>, vector<128x256xbf16>, vector<48x256xf32> -> vector<48x256xf32>
    %8 = vector.extract_strided_slice %7 {offsets = [0, 0], sizes = [48, 128], strides = [1, 1]} : vector<48x256xf32> to vector<48x128xf32>
    %9 = arith.mulf %8, %4 : vector<48x128xf32>
    %10 = vector.extract_strided_slice %7 {offsets = [0, 128], sizes = [48, 128], strides = [1, 1]} : vector<48x256xf32> to vector<48x128xf32>
    %11 = arith.mulf %10, %4 : vector<48x128xf32>
    %12 = tpu.concatenate %9, %11 in 1 : vector<48x128xf32>, vector<48x128xf32> -> vector<48x256xf32>
    %13 = arith.truncf %12 : vector<48x256xf32> to vector<48x256xbf16>
    %cst_12 = arith.constant dense<0.000000e+00> : vector<48x128xf32>
    %14 = tpu.matmul %13, %5, %cst_12 {dimension_numbers = #tpu.dot_dimension_numbers<[1], [1], [0], [0], [0, 0, 1, 0], [], []>} : vector<48x256xbf16>, vector<128x256xbf16>, vector<48x128xf32> -> vector<48x128xf32>
    %c0_13 = arith.constant 0 : index
    %c0_14 = arith.constant 0 : index
    %15 = vector.load %arg4[%c0_13, %c0_14] : memref<48x128xf32, #tpu.memory_space<vmem>>, vector<48x128xf32>
    tpu.vector_store %arg4[%c0_13, %c0_14], %14 {strides = array<i32>} : memref<48x128xf32, #tpu.memory_space<vmem>>, vector<48x128xf32>,
    return
  }
  func.func @transform_0(%arg0: i32) -> (i32, i32) {
    %c0_i32 = arith.constant 0 : i32
    %c0_i32_0 = arith.constant 0 : i32
    return %arg0, %c0_i32 : i32, i32
  }
  func.func @transform_1(%arg0: i32) -> (i32, i32) {
    %c0_i32 = arith.constant 0 : i32
    %c0_i32_0 = arith.constant 0 : i32
    return %arg0, %c0_i32 : i32, i32
  }
  func.func @transform_2(%arg0: i32) -> (i32, i32) {
    %c0_i32 = arith.constant 0 : i32
    %c0_i32_0 = arith.constant 0 : i32
    %c0_i32_1 = arith.constant 0 : i32
    return %c0_i32, %c0_i32_0 : i32, i32
  }
  func.func @transform_3(%arg0: i32) -> (i32, i32) {
    %c0_i32 = arith.constant 0 : i32
    %c0_i32_0 = arith.constant 0 : i32
    return %arg0, %c0_i32 : i32, i32
  }
}

</mosaic_0001>

<bundles_post_ra>
// kernel: tpu_custom_call.1
= control target key start
LH: loop header
LB: loop body
LE: loop exit
PB: predicated region body
PF: predicated region fallthrough
CT: control target
= control target key end

     0   :  { %8 = vsyncpa [#allocation4], 0  ;;  %s607_s0 = inlined_call_operand.hbm [shape: bf16[48,128], index: 0, kind: input, shape index: {}]   ;;  %s608_s1 = inlined_call_operand.hbm [shape: f32[48,65], index: 1, kind: input, shape index: {}]   ;;  %s609_s2 = inlined_call_operand.hbm [shape: bf16[128,256], index: 2, kind: input, shape index: {}]   ;;  %s610_s3 = inlined_call_operand.hbm [shape: f32[48,128], index: 3, kind: output, shape index: {}]  }
   0x1   :  { %9 = vsyncpa [#allocation7], 0 }
   0x2   :  { %10 = vsyncpa [#allocation5], 0  ;;  %s514_s12 = smov [#allocation6]   ;;  %s420_s16 = scalar_lea.hbm %s608_s1, 768 }
   0x3   :  { %s28_s13 = sshll.u32 %s514_s12, 4  ;;  %p421_p0 = scmp.ne.s32.totalorder %s608_s1, %s420_s16  ;;  %s29_s13 = int_to_ptr.vmem [resolvable:$true] %s28_s13 }
   0x4   :  { %p424_p1 = scmp.lt.u32.totalorder %s420_s16, %s608_s1 }
   0x6   :  { %p426_p2 = pnand %p424_p1, %p421_p0 }
   0x8   :  { %429 = shalt.err (!%p426_p2)
}
   0x9   :  { %s430_s21 = scalar_lea.vmem %s29_s13, 768  ;;  %p435_p4 = scmp.lt.s32.totalorder %s29_s13, %s29_s13 }
   0xa   :  { %p431_p3 = scmp.ne.s32.totalorder %s29_s13, %s430_s21  ;;  %p436_p5 = scmp.lt.s32.totalorder %s430_s21, %s430_s21 }
   0xc   :  { %p437_p6 = por %p436_p5, %p435_p4 }
   0xe   :  { %p438_p7 = pnand %p437_p6, %p431_p3 }
  0x10   :  { %441 = shalt.err (!%p438_p7)
}
  0x11   :  { %s515_s22 = smov 128   ;;  %s516_s23 = smov 8  }
  0x12   :  { %34 = dma.hbm_to_vmem [thread:$0]  %s608_s1, 768, %s29_s13, [#allocation7], %s515_s22, %s515_s22, %s516_s23  }
  0x13   :  { %s517_s26 = smov [#allocation3]   ;;  %s442_s30 = scalar_lea.hbm %s607_s0, 384 }
  0x14   :  { %s16_s27 = sshll.u32 %s517_s26, 4  ;;  %p443_p8 = scmp.ne.s32.totalorder %s607_s0, %s442_s30  ;;  %s17_s27 = int_to_ptr.vmem [resolvable:$true] %s16_s27 }
  0x15   :  { %p446_p9 = scmp.lt.u32.totalorder %s442_s30, %s607_s0 }
  0x17   :  { %p448_p10 = pnand %p446_p9, %p443_p8 }
  0x19   :  { %451 = shalt.err (!%p448_p10)
}
  0x1a   :  { %s452_s8 = scalar_lea.vmem %s17_s27, 384  ;;  %p457_p12 = scmp.lt.s32.totalorder %s17_s27, %s17_s27 }
  0x1b   :  { %p453_p11 = scmp.ne.s32.totalorder %s17_s27, %s452_s8  ;;  %p458_p13 = scmp.lt.s32.totalorder %s452_s8, %s452_s8 }
  0x1d   :  { %p459_p0 = por %p458_p13, %p457_p12 }
  0x1f   :  { %p460_p1 = pnand %p459_p0, %p453_p11 }
  0x21   :  { %463 = shalt.err (!%p460_p1)
}
  0x22   :  { %s518_s1 = smov 64   ;;  %s519_s9 = smov 4  }
  0x23   :  { %22 = dma.hbm_to_vmem [thread:$0]  %s607_s0, 384, %s17_s27, [#allocation4], %s518_s1, %s518_s1, %s519_s9  }
  0x24   :  { %s520_s12 = smov [#allocation8]   ;;  %s464_s16 = scalar_lea.hbm %s609_s2, 2048 }
  0x25   :  { %s40_s13 = sshll.u32 %s520_s12, 4  ;;  %p465_p2 = scmp.ne.s32.totalorder %s609_s2, %s464_s16  ;;  %s41_s13 = int_to_ptr.vmem [resolvable:$true] %s40_s13 }
  0x26   :  { %p468_p3 = scmp.lt.u32.totalorder %s464_s16, %s609_s2 }
  0x28   :  { %p470_p4 = pnand %p468_p3, %p465_p2 }
  0x2a   :  { %473 = shalt.err (!%p470_p4)
}
  0x2b   :  { %s474_s21 = scalar_lea.vmem %s41_s13, 2048  ;;  %p479_p6 = scmp.lt.s32.totalorder %s41_s13, %s41_s13 }
  0x2c   :  { %p475_p5 = scmp.ne.s32.totalorder %s41_s13, %s474_s21  ;;  %p480_p7 = scmp.lt.s32.totalorder %s474_s21, %s474_s21 }
  0x2e   :  { %p481_p8 = por %p480_p7, %p479_p6 }
  0x30   :  { %p482_p9 = pnand %p481_p8, %p475_p5 }
  0x32   :  { %485 = shalt.err (!%p482_p9)
}
  0x33   :  { %46 = dma.hbm_to_vmem [thread:$0]  %s609_s2, 2048, %s41_s13, [#allocation7], %s515_s22, %s515_s22, %s516_s23  }
  0x34   :  { %508 = dma.done.wait [#allocation4], 384  }
  0x35   :  { %509 = vsyncadd [#allocation4], 4294966912 }
  0x36   :  { %510 = dma.done.wait [#allocation7], 2816  }
  0x37   :  { %511 = vsyncadd [#allocation7], 4294964480  ;;  %v521_v0 = vmov 0   ;;  %v522_v1 = vmov 0.0   ;;  %v393_v2 = vld [vmem:[#allocation8 + $0x4] ss:$8 sps:$4 sm:$0xff]  }
  0x38   :  { %234 = vmatprep.mubr.bf16.mxu0 %v521_v0  ;;  %57 = vst [vmem:[#allocation2] sm:$0xff] %v522_v1  ;;  %58 = vst [vmem:[#allocation2 + $0x8] sm:$0xff] %v522_v1  ;;  %v395_v3 = vld [vmem:[#allocation8] ss:$8 sps:$4 sm:$0xff]   ;;  %202 = vmatprep.subr.bf16.mxu0 %v393_v2  ;;  %v396_v4 = vld [vmem:[#allocation8 + $0x14] ss:$8 sps:$4 sm:$0xff]  }
  0x39   :  { %59 = vst [vmem:[#allocation2 + $0x10] sm:$0xff] %v522_v1  ;;  %60 = vst [vmem:[#allocation2 + $0x18] sm:$0xff] %v522_v1  ;;  %283 = vmatprep.subr.bf16.mxu1 %v393_v2  ;;  %203 = vmatpush1.bf16.msra.mxu0 %v395_v3  ;;  %v398_v5 = vld [vmem:[#allocation8 + $0x10] ss:$8 sps:$4 sm:$0xff]   ;;  %v399_v6 = vld [vmem:[#allocation8 + $0x24] ss:$8 sps:$4 sm:$0xff]  }
  0x3a   :  { %61 = vst [vmem:[#allocation2 + $0x20] sm:$0xff] %v522_v1  ;;  %62 = vst [vmem:[#allocation2 + $0x28] sm:$0xff] %v522_v1  ;;  %284 = vmatpush1.bf16.xpose.msra.mxu1 %v395_v3  ;;  %204 = vmatprep.subr.bf16.mxu0 %v396_v4  ;;  %v401_v7 = vld [vmem:[#allocation8 + $0x20] ss:$8 sps:$4 sm:$0xff]   ;;  %v402_v8 = vld [vmem:[#allocation8 + $0x34] ss:$8 sps:$4 sm:$0xff]  }
  0x3b   :  { %285 = vmatprep.subr.bf16.mxu1 %v396_v4  ;;  %vm69_vm0 = vcmask 531456   ;;  %v404_v9 = vld [vmem:[#allocation8 + $0x30] ss:$8 sps:$4 sm:$0xff]   ;;  %v405_v10 = vld [vmem:[#allocation8 + $0x44] ss:$8 sps:$4 sm:$0xff]   ;;  %s523_s2 = smov [#allocation9]  }
  0x3c   :  { %v63_v11 = vld [vmem:[#allocation6] sm:$0xff]  ;;  %v407_v12 = vld [vmem:[#allocation8 + $0x40] ss:$8 sps:$4 sm:$0xff]   ;;  %v411_v15 = vld [vmem:[#allocation8 + $0x64] ss:$8 sps:$4 sm:$0xff]   ;;  %s351_s25 = sshll.u32 %s523_s2, 4  ;;  %s352_s25 = int_to_ptr.vmem [resolvable:$true] %s351_s25 }
  0x3d   :  { %205 = vmatpush1.bf16.msra.mxu0 %v398_v5  ;;  %70 = vst.msk [vmem:[#allocation2] sm:$0xff] %vm69_vm0, %v63_v11  ;;  %v408_v13 = vld [vmem:[#allocation8 + $0x54] ss:$8 sps:$4 sm:$0xff]   ;;  %v410_v14 = vld [vmem:[#allocation8 + $0x50] ss:$8 sps:$4 sm:$0xff]   ;;  %v418_v20 = vld [vmem:[#allocation3 + $0x8] sm:$0xff]   ;;  %p491_p11 = scmp.lt.s32.totalorder %s352_s25, %s352_s25 }
  0x3e   :  { %206 = vmatprep.subr.bf16.mxu0 %v399_v6  ;;  %v413_v16 = vld [vmem:[#allocation8 + $0x60] ss:$8 sps:$4 sm:$0xff]   ;;  %v414_v17 = vld [vmem:[#allocation8 + $0x74] ss:$8 sps:$4 sm:$0xff]   ;;  %v416_v18 = vld [vmem:[#allocation8 + $0x70] ss:$8 sps:$4 sm:$0xff]  }
  0x3f   :  { %v417_v19 = vld [vmem:[#allocation3] sm:$0xff]   ;;  %v419_v21 = vld [vmem:[#allocation3 + $0x10] sm:$0xff]   ;;  %v65_v23 = vld [vmem:[#allocation6 + $0x10] sm:$0xff]  ;;  %s486_s26 = scalar_lea.vmem %s352_s25, 768 }
  0x40   :  { %v64_v22 = vld [vmem:[#allocation6 + $0x8] sm:$0xff]  ;;  %72 = vst.msk [vmem:[#allocation2 + $0x10] sm:$0xff] %vm69_vm0, %v65_v23  ;;  %v66_v24 = vld [vmem:[#allocation6 + $0x18] sm:$0xff]  ;;  %v67_v25 = vld [vmem:[#allocation6 + $0x20] sm:$0xff]  ;;  %p487_p10 = scmp.ne.s32.totalorder %s352_s25, %s486_s26  ;;  %p492_p12 = scmp.lt.s32.totalorder %s486_s26, %s486_s26 }
  0x41   :  { %207 = vmatpush1.bf16.msra.mxu0 %v401_v7  ;;  %71 = vst.msk [vmem:[#allocation2 + $0x8] sm:$0xff] %vm69_vm0, %v64_v22  ;;  %73 = vst.msk [vmem:[#allocation2 + $0x18] sm:$0xff] %vm69_vm0, %v66_v24  ;;  %v68_v26 = vld [vmem:[#allocation6 + $0x28] sm:$0xff] }
  0x42   :  { %286 = vmatpush1.bf16.xpose.msra.mxu1 %v398_v5  ;;  %208 = vmatprep.subr.bf16.mxu0 %v402_v8  ;;  %74 = vst.msk [vmem:[#allocation2 + $0x20] sm:$0xff] %vm69_vm0, %v67_v25  ;;  %75 = vst.msk [vmem:[#allocation2 + $0x28] sm:$0xff] %vm69_vm0, %v68_v26  ;;  %p493_p13 = por %p492_p12, %p491_p11 }
  0x43   :  { %287 = vmatprep.subr.bf16.mxu1 %v399_v6 }
  0x44   :  { %v76_v27 = vld [vmem:[#allocation2] sm:$0xff]  ;;  %p494_p0 = pnand %p493_p13, %p487_p10 }
  0x45   :  { %209 = vmatpush1.bf16.msra.mxu0 %v404_v9 }
  0x46   :  { %210 = vmatprep.subr.bf16.mxu0 %v405_v10 }
  0x47   :  { %v78_v39 = vld [vmem:[#allocation2 + $0x10] sm:$0xff] }
  0x48   :  { %v77_v29 = vld [vmem:[#allocation2 + $0x8] sm:$0xff]  ;;  %v79_v41 = vld [vmem:[#allocation2 + $0x18] sm:$0xff] }
  0x49   :  { %211 = vmatpush1.bf16.msra.mxu0 %v407_v12  ;;  %v80_v51 = vld [vmem:[#allocation2 + $0x20] sm:$0xff]  ;;  %v81_v53 = vld [vmem:[#allocation2 + $0x28] sm:$0xff] }
  0x4a   :  { %288 = vmatpush1.bf16.xpose.msra.mxu1 %v401_v7  ;;  %212 = vmatprep.subr.bf16.mxu0 %v408_v13 }
  0x4b   :  { %289 = vmatprep.subr.bf16.mxu1 %v402_v8 }
  0x4d   :  { %213 = vmatpush1.bf16.msra.mxu0 %v410_v14 }
  0x4e   :  { %214 = vmatprep.subr.bf16.mxu0 %v411_v15 }
  0x51   :  { %215 = vmatpush1.bf16.msra.mxu0 %v413_v16 }
  0x52   :  { %290 = vmatpush1.bf16.xpose.msra.mxu1 %v404_v9  ;;  %216 = vmatprep.subr.bf16.mxu0 %v414_v17 }
  0x53   :  { %291 = vmatprep.subr.bf16.mxu1 %v405_v10 }
  0x55   :  { %217 = vmatpush1.bf16.msra.mxu0 %v416_v18 }
  0x58   :  { %235 = vmatmul.mubr.bf16.vlgmr.msra.gmra.mrb[0].mxu0 %v417_v19 }
  0x59   :  { %244 = vmatprep.mubr.bf16.mxu0 %v521_v0 }
  0x5a   :  { %292 = vmatpush1.bf16.xpose.msra.mxu1 %v407_v12 }
  0x5b   :  { %293 = vmatprep.subr.bf16.mxu1 %v408_v13 }
  0x60   :  { %245 = vmatmul.mubr.bf16.gmra.mrb[4].mxu0 %v418_v20 }
  0x61   :  { %254 = vmatprep.mubr.bf16.mxu0 %v521_v0 }
  0x62   :  { %294 = vmatpush1.bf16.xpose.msra.mxu1 %v410_v14 }
  0x63   :  { %295 = vmatprep.subr.bf16.mxu1 %v411_v15 }
  0x68   :  { %255 = vmatmul.mubr.bf16.gmra.mrb[8].mxu0 %v419_v21 }
  0x6a   :  { %296 = vmatpush1.bf16.xpose.msra.mxu1 %v413_v16 }
  0x6b   :  { %297 = vmatprep.subr.bf16.mxu1 %v414_v17 }
  0x72   :  { %298 = vmatpush1.bf16.xpose.msra.mxu1 %v416_v18 }
 0x12b   :  { %v236_v28 = vpop.f32.mrb[0].mxu0 }
 0x12c   :  { %v238_v30 = vpop.f32.mrb[1].mxu0  ;;  %v265_v32 = vmul.f32 %v236_v28, %v76_v27 }
 0x12d   :  { %v240_v31 = vpop.f32.mrb[2].mxu0  ;;  %v271_v35 = vmul.f32 %v238_v30, %v76_v27 }
 0x12e   :  { %v266_v33 = vmul.f32 %v240_v31, %v77_v29  ;;  %v242_v34 = vpop.f32.mrb[3].mxu0 }
 0x12f   :  { %v272_v36 = vmul.f32 %v242_v34, %v77_v29 }
 0x130   :  { %v277_v37 = vpack.c.bf16 %v266_v33, %v265_v32 }
 0x131   :  { %v278_v38 = vpack.c.bf16 %v272_v36, %v271_v35 }
 0x133   :  { %v246_v40 = vpop.f32.mrb[4].mxu0  ;;  %315 = vmatprep.mubr.bf16.mxu1 %v278_v38 }
 0x134   :  { %v248_v42 = vpop.f32.mrb[5].mxu0  ;;  %316 = vmatmul.mubr.bf16.vlgmr.msra.gmra.mrb[0].mxu1 %v277_v37  ;;  %v267_v44 = vmul.f32 %v246_v40, %v78_v39 }
 0x135   :  { %v250_v43 = vpop.f32.mrb[6].mxu0  ;;  %v273_v47 = vmul.f32 %v248_v42, %v78_v39 }
 0x136   :  { %v268_v45 = vmul.f32 %v250_v43, %v79_v41  ;;  %v252_v46 = vpop.f32.mrb[7].mxu0 }
 0x137   :  { %v274_v48 = vmul.f32 %v252_v46, %v79_v41 }
 0x138   :  { %v279_v49 = vpack.c.bf16 %v268_v45, %v267_v44 }
 0x139   :  { %v280_v50 = vpack.c.bf16 %v274_v48, %v273_v47 }
 0x13b   :  { %v256_v52 = vpop.f32.mrb[8].mxu0  ;;  %323 = vmatprep.mubr.bf16.mxu1 %v280_v50 }
 0x13c   :  { %v258_v54 = vpop.f32.mrb[9].mxu0  ;;  %324 = vmatmul.mubr.bf16.gmra.mrb[4].mxu1 %v279_v49  ;;  %v269_v56 = vmul.f32 %v256_v52, %v80_v51 }
 0x13d   :  { %v260_v55 = vpop.f32.mrb[10].mxu0  ;;  %v275_v59 = vmul.f32 %v258_v54, %v80_v51 }
 0x13e   :  { %v270_v57 = vmul.f32 %v260_v55, %v81_v53  ;;  %v262_v58 = vpop.f32.mrb[11].mxu0 }
 0x13f   :  { %v276_v60 = vmul.f32 %v262_v58, %v81_v53 }
 0x140   :  { %v281_v61 = vpack.c.bf16 %v270_v57, %v269_v56 }
 0x141   :  { %v282_v62 = vpack.c.bf16 %v276_v60, %v275_v59 }
 0x143   :  { %331 = vmatprep.mubr.bf16.mxu1 %v282_v62 }
 0x144   :  { %332 = vmatmul.mubr.bf16.gmra.mrb[8].mxu1 %v281_v61 }
 0x207   :  { %v317_v63 = vpop.f32.mrb[0].mxu1 }
 0x208   :  { %340 = vst [vmem:[#allocation9] sm:$0xff] %v317_v63  ;;  %v319_v0 = vpop.f32.mrb[1].mxu1 }
 0x209   :  { %v320_v1 = vpop.f32.mrb[2].mxu1 }
 0x20a   :  { %341 = vst [vmem:[#allocation9 + $0x8] sm:$0xff] %v320_v1  ;;  %v322_v2 = vpop.f32.mrb[3].mxu1 }
 0x20f   :  { %v325_v3 = vpop.f32.mrb[4].mxu1 }
 0x210   :  { %342 = vst [vmem:[#allocation9 + $0x10] sm:$0xff] %v325_v3  ;;  %v327_v4 = vpop.f32.mrb[5].mxu1 }
 0x211   :  { %v328_v5 = vpop.f32.mrb[6].mxu1 }
 0x212   :  { %343 = vst [vmem:[#allocation9 + $0x18] sm:$0xff] %v328_v5  ;;  %v330_v6 = vpop.f32.mrb[7].mxu1 }
 0x217   :  { %v333_v7 = vpop.f32.mrb[8].mxu1 }
 0x218   :  { %344 = vst [vmem:[#allocation9 + $0x20] sm:$0xff] %v333_v7  ;;  %v335_v8 = vpop.f32.mrb[9].mxu1 }
 0x219   :  { %v336_v9 = vpop.f32.mrb[10].mxu1 }
 0x21a   :  { %345 = vst [vmem:[#allocation9 + $0x28] sm:$0xff] %v336_v9  ;;  %v338_v10 = vpop.f32.mrb[11].mxu1 }
 0x21b   :  { %497 = shalt.err (!%p494_p0)
}
 0x21c   :  { %s498_s29 = scalar_lea.hbm %s610_s3, 768 }
 0x21d   :  { %p499_p1 = scmp.ne.s32.totalorder %s610_s3, %s498_s29  ;;  %p502_p2 = scmp.lt.u32.totalorder %s498_s29, %s610_s3 }
 0x21f   :  { %p504_p3 = pnand %p502_p2, %p499_p1 }
 0x221   :  { %507 = shalt.err (!%p504_p3)
}
 0x222   :  { %357 = dma.vmem_to_hbm [thread:$0]  %s352_s25, 768, %s610_s3, [#allocation5], %s515_s22, %s515_s22, %s516_s23  }
 0x223   :  { %512 = dma.done.wait [#allocation5], 768  }
 0x224   :  { %513 = vsyncadd [#allocation5], 4294966528 }
 0x225   :  { %361 = vsyncpa [#allocation4], 1 }
 0x226   :  { %362 = vsyncpa [#allocation7], 1 }
 0x227   :  { %363 = vsyncpa [#allocation5], 1 }

</bundles_post_ra>
